<compile_context>
chip_gen: v7x
topology: tpu7x:2x2x1
jax: 0.10.0
libtpu: 0.0.40
codegen_flags: <defaults>
</compile_context>

<pallas_src>
import jax
import jax.numpy as jnp
from jax.experimental import pallas as pl
from jax.experimental.pallas import tpu as pltpu

LANES = 128
SUBLANES = 8
MIN_ROW_MULT = 32                    # legal sublane tile for f32 / bf16 / int8
MIN_PAD_ELEMS = MIN_ROW_MULT * LANES  # 4096 elements


def _round_up(x, m):
    return ((x + m - 1) // m) * m


def _myloss_kernel(nvalid_ref, x_ref, t_ref, out_ref, acc_ref):
    """Grid axis 0 walks row-tiles of the lane-dense [rows, 128] slab.

    acc_ref: VMEM f32 [4, 8, 128] persistent accumulator (one vreg / plane):
      plane 0: sum of per-element BCE terms
      plane 1: sum of sigmoid(x) * t          (== pos_score for binary t)
      plane 2: sum of t                       (== pos_cnt  for binary t)
      plane 3: sum of sigmoid(x)
    Only the last grid step masks against the valid-element count; all other
    tiles are guaranteed fully valid by the wrapper's tiling.
    """
    i = pl.program_id(0)
    nprog = pl.num_programs(0)
    tr, lanes = x_ref.shape

    @pl.when(i == 0)
    def _init():
        acc_ref[...] = jnp.zeros_like(acc_ref)

    def accumulate(masked):
        x = x_ref[...].astype(jnp.float32)
        t = t_ref[...].astype(jnp.float32)

        # One EUP exp per element, shared by sigmoid and stable softplus.
        e = jnp.exp(-jnp.abs(x))
        one_plus_e = 1.0 + e
        inv = pl.reciprocal(one_plus_e)              # exact
        sig = jnp.where(x >= 0.0, inv, e * inv)      # sigmoid(x), overflow-safe
        # Numerically stable BCE-with-logits: max(x,0) - x*t + log(1+exp(-|x|)).
        bce = jnp.maximum(x, 0.0) - x * t + jnp.log(one_plus_e)

        planes = (bce, sig * t, t, sig)

        if masked:
            # Tile-local index vs. remaining valid elements in this tile.
            rem = nvalid_ref[0] - i * (tr * lanes)
            row = jax.lax.broadcasted_iota(jnp.int32, (tr, lanes), 0)
            lane = jax.lax.broadcasted_iota(jnp.int32, (tr, lanes), 1)
            valid = (row * lanes + lane) < rem
            # where-select (not multiply) so NaN/Inf garbage in a ragged
            # boundary block cannot leak into the sums.
            planes = tuple(jnp.where(valid, p, 0.0) for p in planes)

        # In-tile partial reduction (pure VPU vreg adds) down to one vreg per
        # plane, then a single small RMW add into the persistent accumulator.
        for k, p in enumerate(planes):
            folded = p.reshape(tr // SUBLANES, SUBLANES, lanes).sum(axis=0)
            acc_ref[k, :, :] += folded

    @pl.when(i != nprog - 1)
    def _fast_path():
        accumulate(masked=False)

    @pl.when(i == nprog - 1)
    def _last_tile():
        accumulate(masked=True)
        # Finalize: the only cross-lane (XLU) reductions in the whole kernel.
        n = nvalid_ref[0].astype(jnp.float32)
        sum_bce = jnp.sum(acc_ref[0, :, :])
        pos_s = jnp.sum(acc_ref[1, :, :])
        pos_c = jnp.sum(acc_ref[2, :, :])
        sum_sig = jnp.sum(acc_ref[3, :, :])
        out_ref[0, 0] = sum_bce / n              # mean BCE loss
        out_ref[0, 1] = pos_s                    # pos_score
        out_ref[0, 2] = pos_c                    # pos_cnt (as f32)
        out_ref[0, 3] = sum_sig - pos_s          # neg_score (binary targets)
        out_ref[0, 4] = n - pos_c                # neg_cnt   (binary targets)


def _run_kernel(logits, target, *, max_tile_rows=4096):
    """logits: [B, 1] or [B] (any float dtype), target: [B] (0/1).

    Returns (loss, pos_score, pos_cnt, neg_score, neg_cnt).
    """
    x = logits.reshape(-1)                       # .squeeze(-1)
    t = target.reshape(-1)
    b = x.shape[0]

    tile_cap = _round_up(max(int(max_tile_rows), MIN_ROW_MULT), MIN_ROW_MULT)
    rows_min = _round_up(b, MIN_PAD_ELEMS) // LANES     # multiple of 32
    tr = min(tile_cap, rows_min)                        # multiple of 32, <= rows

    if b % MIN_PAD_ELEMS == 0:
        # Aligned batch: no pad copy at all.  If rows % tr != 0 the last grid
        # step is a ragged boundary block; its out-of-bounds contents are
        # masked in-kernel.
        rows = rows_min
    else:
        # A pad copy is unavoidable (need a [rows,128] view); pad to whole
        # blocks so every block is in-bounds (padded zeros are masked too).
        rows = _round_up(rows_min, tr)
        pad = rows * LANES - b
        x = jnp.pad(x, (0, pad))
        t = jnp.pad(t, (0, pad))

    num_tiles = pl.cdiv(rows, tr)
    x2 = x.reshape(rows, LANES)                  # native dtype, cast on-chip
    t2 = t.reshape(rows, LANES)
    nvalid = jnp.array([b], dtype=jnp.int32)     # scalar-prefetch valid count

    out = pl.pallas_call(
        _myloss_kernel,
        out_shape=jax.ShapeDtypeStruct((1, 5), jnp.float32),
        grid_spec=pltpu.PrefetchScalarGridSpec(
            num_scalar_prefetch=1,
            grid=(num_tiles,),
            in_specs=[
                pl.BlockSpec((tr, LANES), lambda i, nv: (i, 0)),
                pl.BlockSpec((tr, LANES), lambda i, nv: (i, 0)),
            ],
            out_specs=pl.BlockSpec(memory_space=pltpu.SMEM),
            scratch_shapes=[pltpu.VMEM((4, SUBLANES, LANES), jnp.float32)],
        ),
        compiler_params=pltpu.CompilerParams(
            dimension_semantics=("arbitrary",)),
    )(nvalid, x2, t2)

    loss = out[0, 0]
    pos_s = out[0, 1]
    pos_c = out[0, 2].astype(jnp.int32)
    neg_s = out[0, 3]
    neg_c = out[0, 4].astype(jnp.int32)
    return loss, pos_s, pos_c, neg_s, neg_c


def myloss_forward(logits, target, mode=None):
    """Mirror of Myloss.forward; `logits` plays the role of output.logits."""
    loss, pos_s, pos_c, neg_s, neg_c = _run_kernel(logits, target)
    if mode == 'test':
        return loss, pos_s, pos_c, neg_s, neg_c
    return loss


def _reference(logits, target):
    x = logits.reshape(-1).astype(jnp.float32)
    t = target.reshape(-1).astype(jnp.float32)
    bce = jnp.maximum(x, 0.0) - x * t + jnp.log1p(jnp.exp(-jnp.abs(x)))
    loss = jnp.mean(bce)
    sig = jax.nn.sigmoid(x)
    nt = target.reshape(-1).astype(jnp.int32)
    return (loss,
            jnp.sum(jnp.where(nt == 1, sig, 0.0)),
            jnp.sum(nt == 1),
            jnp.sum(jnp.where(nt == 0, sig, 0.0)),
            jnp.sum(nt == 0))


if __name__ == "__main__":
    key = jax.random.PRNGKey(0)
    k1, k2, k3, k4, k5, k6 = jax.random.split(key, 6)

    # Case 1: small batch NOT a multiple of 128 (pad path, single tile).
    B = 300
    logits = jax.random.normal(k1, (B, 1), dtype=jnp.float32)   # output.logits
    target = (jax.random.uniform(k2, (B,)) > 0.5).astype(jnp.float32)

    loss, pos_s, pos_c, neg_s, neg_c = myloss_forward(logits, target, mode='test')
    jax.block_until_ready((loss, pos_s, pos_c, neg_s, neg_c))

    r_loss, r_ps, r_pc, r_ns, r_nc = _reference(logits, target)
    assert jnp.allclose(loss, r_loss, atol=1e-5)
    assert jnp.allclose(pos_s, r_ps, rtol=1e-5, atol=1e-4)
    assert jnp.allclose(neg_s, r_ns, rtol=1e-5, atol=1e-4)
    assert int(pos_c) == int(r_pc)
    assert int(neg_c) == int(r_nc)

    loss_only = myloss_forward(logits, target)                  # train mode
    jax.block_until_ready(loss_only)
    assert jnp.allclose(loss_only, r_loss, atol=1e-5)

    # Case 2: force the multi-tile grid / accumulator path with a tiny tile.
    B2 = 8900
    logits2 = jax.random.normal(k3, (B2, 1), dtype=jnp.float32)
    target2 = (jax.random.uniform(k4, (B2,)) > 0.5).astype(jnp.float32)
    outs2 = _run_kernel(logits2, target2, max_tile_rows=32)
    jax.block_until_ready(outs2)
    r2 = _reference(logits2, target2)
    assert jnp.allclose(outs2[0], r2[0], rtol=1e-5, atol=1e-4)
    assert jnp.allclose(outs2[1], r2[1], rtol=1e-4, atol=1e-3)
    assert jnp.allclose(outs2[3], r2[3], rtol=1e-4, atol=1e-3)
    assert int(outs2[2]) == int(r2[2])
    assert int(outs2[4]) == int(r2[4])

    # Case 3: aligned batch (no pad copy) with a ragged last block
    # (rows=96, tile=64 -> tile 1 covers rows 64..127, masked in-kernel).
    B3 = 3 * MIN_PAD_ELEMS
    logits3 = jax.random.normal(k5, (B3, 1), dtype=jnp.float32)
    target3 = (jax.random.uniform(k6, (B3,)) > 0.5).astype(jnp.float32)
    outs3 = _run_kernel(logits3, target3, max_tile_rows=64)
    jax.block_until_ready(outs3)
    r3 = _reference(logits3, target3)
    assert jnp.allclose(outs3[0], r3[0], rtol=1e-5, atol=1e-4)
    assert jnp.allclose(outs3[1], r3[1], rtol=1e-4, atol=1e-3)
    assert jnp.allclose(outs3[3], r3[3], rtol=1e-4, atol=1e-3)
    assert int(outs3[2]) == int(r3[2])
    assert int(outs3[4]) == int(r3[4])

    print("KERNEL_OK")
</pallas_src>

<mosaic_0001>
module attributes {stable_mosaic.version = 11 : i64} {
  func.func @_myloss_kernel(%arg0: i32, %arg1: memref<1xi32, #tpu.memory_space<smem>>, %arg2: memref<32x128xf32, #tpu.memory_space<vmem>>, %arg3: memref<32x128xf32, #tpu.memory_space<vmem>>, %arg4: memref<1x5xf32, #tpu.memory_space<smem>>, %arg5: memref<4x8x128xf32, #tpu.memory_space<vmem>>) attributes {dimension_semantics = [#tpu.dimension_semantics<arbitrary>], iteration_bounds = array<i64: 1>, scalar_prefetch = 1 : i64, scratch_operands = 1 : i64, tpu.core_type = #tpu.core_type<tc>, window_params = [{transform_indices = @transform_0, window_bounds = array<i64: 32, 128>}, {transform_indices = @transform_1, window_bounds = array<i64: 32, 128>}, {transform_indices = @transform_2, window_bounds = array<i64: 1, 5>}]} {
    %c0_i32 = arith.constant 0 : i32
    %0 = arith.cmpi eq, %arg0, %c0_i32 : i32
    %1 = arith.extui %0 : i1 to i32
    %c0_i32_0 = arith.constant 0 : i32
    %2 = arith.cmpi ne, %1, %c0_i32_0 : i32
    scf.if %2 {
      %cst = arith.constant 0.000000e+00 : f32
      %9 = vector.broadcast %cst : f32 to vector<4x8x128xf32>
      %c0 = arith.constant 0 : index
      %c0_5 = arith.constant 0 : index
      %c0_6 = arith.constant 0 : index
      %10 = vector.load %arg5[%c0, %c0_5, %c0_6] : memref<4x8x128xf32, #tpu.memory_space<vmem>>, vector<4x8x128xf32>
      tpu.vector_store %arg5[%c0, %c0_5, %c0_6], %9 {strides = array<i32>} : memref<4x8x128xf32, #tpu.memory_space<vmem>>, vector<4x8x128xf32>,
    } else {
    }
    %c0_i32_1 = arith.constant 0 : i32
    %3 = arith.cmpi ne, %arg0, %c0_i32_1 : i32
    %4 = arith.extui %3 : i1 to i32
    %c0_i32_2 = arith.constant 0 : i32
    %5 = arith.cmpi ne, %4, %c0_i32_2 : i32
    scf.if %5 {
      %c0 = arith.constant 0 : index
      %c0_5 = arith.constant 0 : index
      %9 = vector.load %arg2[%c0, %c0_5] : memref<32x128xf32, #tpu.memory_space<vmem>>, vector<32x128xf32>
      %c0_6 = arith.constant 0 : index
      %c0_7 = arith.constant 0 : index
      %10 = vector.load %arg3[%c0_6, %c0_7] : memref<32x128xf32, #tpu.memory_space<vmem>>, vector<32x128xf32>
      %11 = math.absf %9 : vector<32x128xf32>
      %cst = arith.constant 0.000000e+00 : f32
      %12 = vector.broadcast %cst : f32 to vector<32x128xf32>
      %13 = arith.subf %12, %11 : vector<32x128xf32>
      %14 = math.exp %13 : vector<32x128xf32>
      %cst_8 = arith.constant 1.000000e+00 : f32
      %15 = vector.broadcast %cst_8 : f32 to vector<32x128xf32>
      %16 = arith.addf %15, %14 : vector<32x128xf32>
      %17 = tpu.reciprocal %16 : vector<32x128xf32> -> vector<32x128xf32>
      %cst_9 = arith.constant 0.000000e+00 : f32
      %18 = vector.broadcast %cst_9 : f32 to vector<32x128xf32>
      %19 = arith.cmpf oge, %9, %18 : vector<32x128xf32>
      %20 = arith.mulf %14, %17 : vector<32x128xf32>
      %21 = arith.select %19, %17, %20 : vector<32x128xi1>, vector<32x128xf32>
      %cst_10 = arith.constant 0.000000e+00 : f32
      %22 = vector.broadcast %cst_10 : f32 to vector<32x128xf32>
      %23 = arith.maximumf %9, %22 : vector<32x128xf32>
      %24 = arith.mulf %9, %10 : vector<32x128xf32>
      %25 = arith.subf %23, %24 : vector<32x128xf32>
      %26 = math.log %16 : vector<32x128xf32>
      %27 = arith.addf %25, %26 : vector<32x128xf32>
      %28 = arith.mulf %21, %10 : vector<32x128xf32>
      %29 = vector.shape_cast %27 : vector<32x128xf32> to vector<4x8x128xf32>
      %cst_11 = arith.constant dense<0.000000e+00> : vector<8x128xf32>
      %30 = vector.multi_reduction <add>, %29, %cst_11 [0] : vector<4x8x128xf32> to vector<8x128xf32>
      %c0_12 = arith.constant 0 : index
      %c0_13 = arith.constant 0 : index
      %c0_14 = arith.constant 0 : index
      %31 = vector.load %arg5[%c0_12, %c0_13, %c0_14] : memref<4x8x128xf32, #tpu.memory_space<vmem>>, vector<1x8x128xf32>
      %32 = vector.shape_cast %31 : vector<1x8x128xf32> to vector<8x128xf32>
      %33 = arith.addf %32, %30 : vector<8x128xf32>
      %c0_15 = arith.constant 0 : index
      %c0_16 = arith.constant 0 : index
      %c0_17 = arith.constant 0 : index
      %34 = vector.load %arg5[%c0_15, %c0_16, %c0_17] : memref<4x8x128xf32, #tpu.memory_space<vmem>>, vector<1x8x128xf32>
      %35 = vector.shape_cast %34 : vector<1x8x128xf32> to vector<8x128xf32>
      %36 = vector.shape_cast %33 : vector<8x128xf32> to vector<1x8x128xf32>
      tpu.vector_store %arg5[%c0_15, %c0_16, %c0_17], %36 {strides = array<i32>} : memref<4x8x128xf32, #tpu.memory_space<vmem>>, vector<1x8x128xf32>,
      %37 = vector.shape_cast %28 : vector<32x128xf32> to vector<4x8x128xf32>
      %cst_18 = arith.constant dense<0.000000e+00> : vector<8x128xf32>
      %38 = vector.multi_reduction <add>, %37, %cst_18 [0] : vector<4x8x128xf32> to vector<8x128xf32>
      %c1 = arith.constant 1 : index
      %c0_19 = arith.constant 0 : index
      %c0_20 = arith.constant 0 : index
      %39 = vector.load %arg5[%c1, %c0_19, %c0_20] : memref<4x8x128xf32, #tpu.memory_space<vmem>>, vector<1x8x128xf32>
      %40 = vector.shape_cast %39 : vector<1x8x128xf32> to vector<8x128xf32>
      %41 = arith.addf %40, %38 : vector<8x128xf32>
      %c1_21 = arith.constant 1 : index
      %c0_22 = arith.constant 0 : index
      %c0_23 = arith.constant 0 : index
      %42 = vector.load %arg5[%c1_21, %c0_22, %c0_23] : memref<4x8x128xf32, #tpu.memory_space<vmem>>, vector<1x8x128xf32>
      %43 = vector.shape_cast %42 : vector<1x8x128xf32> to vector<8x128xf32>
      %44 = vector.shape_cast %41 : vector<8x128xf32> to vector<1x8x128xf32>
      tpu.vector_store %arg5[%c1_21, %c0_22, %c0_23], %44 {strides = array<i32>} : memref<4x8x128xf32, #tpu.memory_space<vmem>>, vector<1x8x128xf32>,
      %45 = vector.shape_cast %10 : vector<32x128xf32> to vector<4x8x128xf32>
      %cst_24 = arith.constant dense<0.000000e+00> : vector<8x128xf32>
      %46 = vector.multi_reduction <add>, %45, %cst_24 [0] : vector<4x8x128xf32> to vector<8x128xf32>
      %c2 = arith.constant 2 : index
      %c0_25 = arith.constant 0 : index
      %c0_26 = arith.constant 0 : index
      %47 = vector.load %arg5[%c2, %c0_25, %c0_26] : memref<4x8x128xf32, #tpu.memory_space<vmem>>, vector<1x8x128xf32>
      %48 = vector.shape_cast %47 : vector<1x8x128xf32> to vector<8x128xf32>
      %49 = arith.addf %48, %46 : vector<8x128xf32>
      %c2_27 = arith.constant 2 : index
      %c0_28 = arith.constant 0 : index
      %c0_29 = arith.constant 0 : index
      %50 = vector.load %arg5[%c2_27, %c0_28, %c0_29] : memref<4x8x128xf32, #tpu.memory_space<vmem>>, vector<1x8x128xf32>
      %51 = vector.shape_cast %50 : vector<1x8x128xf32> to vector<8x128xf32>
      %52 = vector.shape_cast %49 : vector<8x128xf32> to vector<1x8x128xf32>
      tpu.vector_store %arg5[%c2_27, %c0_28, %c0_29], %52 {strides = array<i32>} : memref<4x8x128xf32, #tpu.memory_space<vmem>>, vector<1x8x128xf32>,
      %53 = vector.shape_cast %21 : vector<32x128xf32> to vector<4x8x128xf32>
      %cst_30 = arith.constant dense<0.000000e+00> : vector<8x128xf32>
      %54 = vector.multi_reduction <add>, %53, %cst_30 [0] : vector<4x8x128xf32> to vector<8x128xf32>
      %c3 = arith.constant 3 : index
      %c0_31 = arith.constant 0 : index
      %c0_32 = arith.constant 0 : index
      %55 = vector.load %arg5[%c3, %c0_31, %c0_32] : memref<4x8x128xf32, #tpu.memory_space<vmem>>, vector<1x8x128xf32>
      %56 = vector.shape_cast %55 : vector<1x8x128xf32> to vector<8x128xf32>
      %57 = arith.addf %56, %54 : vector<8x128xf32>
      %c3_33 = arith.constant 3 : index
      %c0_34 = arith.constant 0 : index
      %c0_35 = arith.constant 0 : index
      %58 = vector.load %arg5[%c3_33, %c0_34, %c0_35] : memref<4x8x128xf32, #tpu.memory_space<vmem>>, vector<1x8x128xf32>
      %59 = vector.shape_cast %58 : vector<1x8x128xf32> to vector<8x128xf32>
      %60 = vector.shape_cast %57 : vector<8x128xf32> to vector<1x8x128xf32>
      tpu.vector_store %arg5[%c3_33, %c0_34, %c0_35], %60 {strides = array<i32>} : memref<4x8x128xf32, #tpu.memory_space<vmem>>, vector<1x8x128xf32>,
    } else {
    }
    %c0_i32_3 = arith.constant 0 : i32
    %6 = arith.cmpi eq, %arg0, %c0_i32_3 : i32
    %7 = arith.extui %6 : i1 to i32
    %c0_i32_4 = arith.constant 0 : i32
    %8 = arith.cmpi ne, %7, %c0_i32_4 : i32
    scf.if %8 {
      %c0 = arith.constant 0 : index
      %c0_5 = arith.constant 0 : index
      %9 = vector.load %arg2[%c0, %c0_5] : memref<32x128xf32, #tpu.memory_space<vmem>>, vector<32x128xf32>
      %c0_6 = arith.constant 0 : index
      %c0_7 = arith.constant 0 : index
      %10 = vector.load %arg3[%c0_6, %c0_7] : memref<32x128xf32, #tpu.memory_space<vmem>>, vector<32x128xf32>
      %11 = math.absf %9 : vector<32x128xf32>
      %cst = arith.constant 0.000000e+00 : f32
      %12 = vector.broadcast %cst : f32 to vector<32x128xf32>
      %13 = arith.subf %12, %11 : vector<32x128xf32>
      %14 = math.exp %13 : vector<32x128xf32>
      %cst_8 = arith.constant 1.000000e+00 : f32
      %15 = vector.broadcast %cst_8 : f32 to vector<32x128xf32>
      %16 = arith.addf %15, %14 : vector<32x128xf32>
      %17 = tpu.reciprocal %16 : vector<32x128xf32> -> vector<32x128xf32>
      %cst_9 = arith.constant 0.000000e+00 : f32
      %18 = vector.broadcast %cst_9 : f32 to vector<32x128xf32>
      %19 = arith.cmpf oge, %9, %18 : vector<32x128xf32>
      %20 = arith.mulf %14, %17 : vector<32x128xf32>
      %21 = arith.select %19, %17, %20 : vector<32x128xi1>, vector<32x128xf32>
      %cst_10 = arith.constant 0.000000e+00 : f32
      %22 = vector.broadcast %cst_10 : f32 to vector<32x128xf32>
      %23 = arith.maximumf %9, %22 : vector<32x128xf32>
      %24 = arith.mulf %9, %10 : vector<32x128xf32>
      %25 = arith.subf %23, %24 : vector<32x128xf32>
      %26 = math.log %16 : vector<32x128xf32>
      %27 = arith.addf %25, %26 : vector<32x128xf32>
      %28 = arith.mulf %21, %10 : vector<32x128xf32>
      %c0_11 = arith.constant 0 : index
      %29 = memref.load %arg1[%c0_11] : memref<1xi32, #tpu.memory_space<smem>>
      %c4096_i32 = arith.constant 4096 : i32
      %30 = arith.muli %arg0, %c4096_i32 : i32
      %31 = arith.subi %29, %30 : i32
      %32 = tpu.iota {dimensions = array<i32: 0>} : vector<32x128xi32>
      %33 = tpu.iota {dimensions = array<i32: 1>} : vector<32x128xi32>
      %c128_i32 = arith.constant 128 : i32
      %34 = vector.broadcast %c128_i32 : i32 to vector<32x128xi32>
      %35 = arith.muli %32, %34 : vector<32x128xi32>
      %36 = arith.addi %35, %33 : vector<32x128xi32>
      %37 = vector.broadcast %31 : i32 to vector<32x128xi32>
      %38 = arith.cmpi slt, %36, %37 : vector<32x128xi32>
      %cst_12 = arith.constant 0.000000e+00 : f32
      %39 = vector.broadcast %cst_12 : f32 to vector<32x128xf32>
      %40 = arith.select %38, %27, %39 : vector<32x128xi1>, vector<32x128xf32>
      %cst_13 = arith.constant 0.000000e+00 : f32
      %41 = vector.broadcast %cst_13 : f32 to vector<32x128xf32>
      %42 = arith.select %38, %28, %41 : vector<32x128xi1>, vector<32x128xf32>
      %cst_14 = arith.constant 0.000000e+00 : f32
      %43 = vector.broadcast %cst_14 : f32 to vector<32x128xf32>
      %44 = arith.select %38, %10, %43 : vector<32x128xi1>, vector<32x128xf32>
      %cst_15 = arith.constant 0.000000e+00 : f32
      %45 = vector.broadcast %cst_15 : f32 to vector<32x128xf32>
      %46 = arith.select %38, %21, %45 : vector<32x128xi1>, vector<32x128xf32>
      %47 = vector.shape_cast %40 : vector<32x128xf32> to vector<4x8x128xf32>
      %cst_16 = arith.constant dense<0.000000e+00> : vector<8x128xf32>
      %48 = vector.multi_reduction <add>, %47, %cst_16 [0] : vector<4x8x128xf32> to vector<8x128xf32>
      %c0_17 = arith.constant 0 : index
      %c0_18 = arith.constant 0 : index
      %c0_19 = arith.constant 0 : index
      %49 = vector.load %arg5[%c0_17, %c0_18, %c0_19] : memref<4x8x128xf32, #tpu.memory_space<vmem>>, vector<1x8x128xf32>
      %50 = vector.shape_cast %49 : vector<1x8x128xf32> to vector<8x128xf32>
      %51 = arith.addf %50, %48 : vector<8x128xf32>
      %c0_20 = arith.constant 0 : index
      %c0_21 = arith.constant 0 : index
      %c0_22 = arith.constant 0 : index
      %52 = vector.load %arg5[%c0_20, %c0_21, %c0_22] : memref<4x8x128xf32, #tpu.memory_space<vmem>>, vector<1x8x128xf32>
      %53 = vector.shape_cast %52 : vector<1x8x128xf32> to vector<8x128xf32>
      %54 = vector.shape_cast %51 : vector<8x128xf32> to vector<1x8x128xf32>
      tpu.vector_store %arg5[%c0_20, %c0_21, %c0_22], %54 {strides = array<i32>} : memref<4x8x128xf32, #tpu.memory_space<vmem>>, vector<1x8x128xf32>,
      %55 = vector.shape_cast %42 : vector<32x128xf32> to vector<4x8x128xf32>
      %cst_23 = arith.constant dense<0.000000e+00> : vector<8x128xf32>
      %56 = vector.multi_reduction <add>, %55, %cst_23 [0] : vector<4x8x128xf32> to vector<8x128xf32>
      %c1 = arith.constant 1 : index
      %c0_24 = arith.constant 0 : index
      %c0_25 = arith.constant 0 : index
      %57 = vector.load %arg5[%c1, %c0_24, %c0_25] : memref<4x8x128xf32, #tpu.memory_space<vmem>>, vector<1x8x128xf32>
      %58 = vector.shape_cast %57 : vector<1x8x128xf32> to vector<8x128xf32>
      %59 = arith.addf %58, %56 : vector<8x128xf32>
      %c1_26 = arith.constant 1 : index
      %c0_27 = arith.constant 0 : index
      %c0_28 = arith.constant 0 : index
      %60 = vector.load %arg5[%c1_26, %c0_27, %c0_28] : memref<4x8x128xf32, #tpu.memory_space<vmem>>, vector<1x8x128xf32>
      %61 = vector.shape_cast %60 : vector<1x8x128xf32> to vector<8x128xf32>
      %62 = vector.shape_cast %59 : vector<8x128xf32> to vector<1x8x128xf32>
      tpu.vector_store %arg5[%c1_26, %c0_27, %c0_28], %62 {strides = array<i32>} : memref<4x8x128xf32, #tpu.memory_space<vmem>>, vector<1x8x128xf32>,
      %63 = vector.shape_cast %44 : vector<32x128xf32> to vector<4x8x128xf32>
      %cst_29 = arith.constant dense<0.000000e+00> : vector<8x128xf32>
      %64 = vector.multi_reduction <add>, %63, %cst_29 [0] : vector<4x8x128xf32> to vector<8x128xf32>
      %c2 = arith.constant 2 : index
      %c0_30 = arith.constant 0 : index
      %c0_31 = arith.constant 0 : index
      %65 = vector.load %arg5[%c2, %c0_30, %c0_31] : memref<4x8x128xf32, #tpu.memory_space<vmem>>, vector<1x8x128xf32>
      %66 = vector.shape_cast %65 : vector<1x8x128xf32> to vector<8x128xf32>
      %67 = arith.addf %66, %64 : vector<8x128xf32>
      %c2_32 = arith.constant 2 : index
      %c0_33 = arith.constant 0 : index
      %c0_34 = arith.constant 0 : index
      %68 = vector.load %arg5[%c2_32, %c0_33, %c0_34] : memref<4x8x128xf32, #tpu.memory_space<vmem>>, vector<1x8x128xf32>
      %69 = vector.shape_cast %68 : vector<1x8x128xf32> to vector<8x128xf32>
      %70 = vector.shape_cast %67 : vector<8x128xf32> to vector<1x8x128xf32>
      tpu.vector_store %arg5[%c2_32, %c0_33, %c0_34], %70 {strides = array<i32>} : memref<4x8x128xf32, #tpu.memory_space<vmem>>, vector<1x8x128xf32>,
      %71 = vector.shape_cast %46 : vector<32x128xf32> to vector<4x8x128xf32>
      %cst_35 = arith.constant dense<0.000000e+00> : vector<8x128xf32>
      %72 = vector.multi_reduction <add>, %71, %cst_35 [0] : vector<4x8x128xf32> to vector<8x128xf32>
      %c3 = arith.constant 3 : index
      %c0_36 = arith.constant 0 : index
      %c0_37 = arith.constant 0 : index
      %73 = vector.load %arg5[%c3, %c0_36, %c0_37] : memref<4x8x128xf32, #tpu.memory_space<vmem>>, vector<1x8x128xf32>
      %74 = vector.shape_cast %73 : vector<1x8x128xf32> to vector<8x128xf32>
      %75 = arith.addf %74, %72 : vector<8x128xf32>
      %c3_38 = arith.constant 3 : index
      %c0_39 = arith.constant 0 : index
      %c0_40 = arith.constant 0 : index
      %76 = vector.load %arg5[%c3_38, %c0_39, %c0_40] : memref<4x8x128xf32, #tpu.memory_space<vmem>>, vector<1x8x128xf32>
      %77 = vector.shape_cast %76 : vector<1x8x128xf32> to vector<8x128xf32>
      %78 = vector.shape_cast %75 : vector<8x128xf32> to vector<1x8x128xf32>
      tpu.vector_store %arg5[%c3_38, %c0_39, %c0_40], %78 {strides = array<i32>} : memref<4x8x128xf32, #tpu.memory_space<vmem>>, vector<1x8x128xf32>,
      %c0_41 = arith.constant 0 : index
      %79 = memref.load %arg1[%c0_41] : memref<1xi32, #tpu.memory_space<smem>>
      %80 = arith.sitofp %79 : i32 to f32
      %c0_42 = arith.constant 0 : index
      %c0_43 = arith.constant 0 : index
      %c0_44 = arith.constant 0 : index
      %81 = vector.load %arg5[%c0_42, %c0_43, %c0_44] : memref<4x8x128xf32, #tpu.memory_space<vmem>>, vector<1x8x128xf32>
      %82 = vector.shape_cast %81 : vector<1x8x128xf32> to vector<8x128xf32>
      %83 = vector.shape_cast %82 : vector<8x128xf32> to vector<1x8x128xf32>
      %cst_45 = arith.constant dense<0.000000e+00> : vector<1xf32>
      %84 = vector.multi_reduction <add>, %83, %cst_45 [1, 2] : vector<1x8x128xf32> to vector<1xf32>
      %85 = vector.shape_cast %84 : vector<1xf32> to vector<1x1x1xf32>
      %86 = vector.extract %85[0, 0, 0] : f32 from vector<1x1x1xf32>
      %c1_46 = arith.constant 1 : index
      %c0_47 = arith.constant 0 : index
      %c0_48 = arith.constant 0 : index
      %87 = vector.load %arg5[%c1_46, %c0_47, %c0_48] : memref<4x8x128xf32, #tpu.memory_space<vmem>>, vector<1x8x128xf32>
      %88 = vector.shape_cast %87 : vector<1x8x128xf32> to vector<8x128xf32>
      %89 = vector.shape_cast %88 : vector<8x128xf32> to vector<1x8x128xf32>
      %cst_49 = arith.constant dense<0.000000e+00> : vector<1xf32>
      %90 = vector.multi_reduction <add>, %89, %cst_49 [1, 2] : vector<1x8x128xf32> to vector<1xf32>
      %91 = vector.shape_cast %90 : vector<1xf32> to vector<1x1x1xf32>
      %92 = vector.extract %91[0, 0, 0] : f32 from vector<1x1x1xf32>
      %c2_50 = arith.constant 2 : index
      %c0_51 = arith.constant 0 : index
      %c0_52 = arith.constant 0 : index
      %93 = vector.load %arg5[%c2_50, %c0_51, %c0_52] : memref<4x8x128xf32, #tpu.memory_space<vmem>>, vector<1x8x128xf32>
      %94 = vector.shape_cast %93 : vector<1x8x128xf32> to vector<8x128xf32>
      %95 = vector.shape_cast %94 : vector<8x128xf32> to vector<1x8x128xf32>
      %cst_53 = arith.constant dense<0.000000e+00> : vector<1xf32>
      %96 = vector.multi_reduction <add>, %95, %cst_53 [1, 2] : vector<1x8x128xf32> to vector<1xf32>
      %97 = vector.shape_cast %96 : vector<1xf32> to vector<1x1x1xf32>
      %98 = vector.extract %97[0, 0, 0] : f32 from vector<1x1x1xf32>
      %c3_54 = arith.constant 3 : index
      %c0_55 = arith.constant 0 : index
      %c0_56 = arith.constant 0 : index
      %99 = vector.load %arg5[%c3_54, %c0_55, %c0_56] : memref<4x8x128xf32, #tpu.memory_space<vmem>>, vector<1x8x128xf32>
      %100 = vector.shape_cast %99 : vector<1x8x128xf32> to vector<8x128xf32>
      %101 = vector.shape_cast %100 : vector<8x128xf32> to vector<1x8x128xf32>
      %cst_57 = arith.constant dense<0.000000e+00> : vector<1xf32>
      %102 = vector.multi_reduction <add>, %101, %cst_57 [1, 2] : vector<1x8x128xf32> to vector<1xf32>
      %103 = vector.shape_cast %102 : vector<1xf32> to vector<1x1x1xf32>
      %104 = vector.extract %103[0, 0, 0] : f32 from vector<1x1x1xf32>
      %105 = arith.divf %86, %80 : f32
      %c0_58 = arith.constant 0 : index
      %c0_59 = arith.constant 0 : index
      %106 = memref.load %arg4[%c0_58, %c0_59] : memref<1x5xf32, #tpu.memory_space<smem>>
      memref.store %105, %arg4[%c0_58, %c0_59] : memref<1x5xf32, #tpu.memory_space<smem>>
      %c0_60 = arith.constant 0 : index
      %c1_61 = arith.constant 1 : index
      %107 = memref.load %arg4[%c0_60, %c1_61] : memref<1x5xf32, #tpu.memory_space<smem>>
      memref.store %92, %arg4[%c0_60, %c1_61] : memref<1x5xf32, #tpu.memory_space<smem>>
      %c0_62 = arith.constant 0 : index
      %c2_63 = arith.constant 2 : index
      %108 = memref.load %arg4[%c0_62, %c2_63] : memref<1x5xf32, #tpu.memory_space<smem>>
      memref.store %98, %arg4[%c0_62, %c2_63] : memref<1x5xf32, #tpu.memory_space<smem>>
      %109 = arith.subf %104, %92 : f32
      %c0_64 = arith.constant 0 : index
      %c3_65 = arith.constant 3 : index
      %110 = memref.load %arg4[%c0_64, %c3_65] : memref<1x5xf32, #tpu.memory_space<smem>>
      memref.store %109, %arg4[%c0_64, %c3_65] : memref<1x5xf32, #tpu.memory_space<smem>>
      %111 = arith.subf %80, %98 : f32
      %c0_66 = arith.constant 0 : index
      %c4 = arith.constant 4 : index
      %112 = memref.load %arg4[%c0_66, %c4] : memref<1x5xf32, #tpu.memory_space<smem>>
      memref.store %111, %arg4[%c0_66, %c4] : memref<1x5xf32, #tpu.memory_space<smem>>
    } else {
    }
    return
  }
  func.func @transform_0(%arg0: i32, %arg1: memref<1xi32, #tpu.memory_space<smem>>) -> (i32, i32) {
    %c0_i32 = arith.constant 0 : i32
    %c0_i32_0 = arith.constant 0 : i32
    return %arg0, %c0_i32 : i32, i32
  }
  func.func @transform_1(%arg0: i32, %arg1: memref<1xi32, #tpu.memory_space<smem>>) -> (i32, i32) {
    %c0_i32 = arith.constant 0 : i32
    %c0_i32_0 = arith.constant 0 : i32
    return %arg0, %c0_i32 : i32, i32
  }
  func.func @transform_2(%arg0: i32, %arg1: memref<1xi32, #tpu.memory_space<smem>>) -> (i32, i32) {
    %c0_i32 = arith.constant 0 : i32
    %c0_i32_0 = arith.constant 0 : i32
    %c0_i32_1 = arith.constant 0 : i32
    return %c0_i32, %c0_i32_0 : i32, i32
  }
}

</mosaic_0001>

<bundles_post_ra>
// kernel: tpu_custom_call.1
= control target key start
LH: loop header
LB: loop body
LE: loop exit
PB: predicated region body
PF: predicated region fallthrough
CT: control target
= control target key end

     0   :  { %9 = vsyncpa [#allocation6], 0  ;;  %s657_s0 = inlined_call_operand.<no memory space> [shape: s32[1], index: 0, kind: input, shape index: {}]   ;;  %s658_s1 = inlined_call_operand.hbm [shape: f32[32,128], index: 1, kind: input, shape index: {}]   ;;  %s659_s2 = inlined_call_operand.hbm [shape: f32[32,128], index: 2, kind: input, shape index: {}]   ;;  %s660_s3 = inlined_call_operand.hbm [shape: f32[1,5], index: 3, kind: output, shape index: {}]  }
   0x1   :  { %10 = vsyncpa [#allocation9], 0 }
   0x2   :  { %11 = vsyncpa [#allocation7], 0  ;;  %s468_s12 = smov [#allocation5]   ;;  %s408_s16 = scalar_lea.hbm %s658_s1, 512 }
   0x3   :  { %s17_s13 = sshll.u32 %s468_s12, 4  ;;  %p409_p0 = scmp.ne.s32.totalorder %s658_s1, %s408_s16  ;;  %s18_s13 = int_to_ptr.vmem [resolvable:$true] %s17_s13 }
   0x4   :  { %p412_p1 = scmp.lt.u32.totalorder %s408_s16, %s658_s1 }
   0x6   :  { %p414_p2 = pnand %p412_p1, %p409_p0 }
   0x8   :  { %417 = shalt.err (!%p414_p2)
}
   0x9   :  { %s418_s21 = scalar_lea.vmem %s18_s13, 512  ;;  %p423_p4 = scmp.lt.s32.totalorder %s18_s13, %s18_s13 }
   0xa   :  { %p419_p3 = scmp.ne.s32.totalorder %s18_s13, %s418_s21  ;;  %p424_p5 = scmp.lt.s32.totalorder %s418_s21, %s418_s21 }
   0xc   :  { %p425_p6 = por %p424_p5, %p423_p4 }
   0xe   :  { %p426_p7 = pnand %p425_p6, %p419_p3 }
  0x10   :  { %429 = shalt.err (!%p426_p7)
}
  0x11   :  { %s469_s22 = smov 128   ;;  %s470_s23 = smov 8  }
  0x12   :  { %23 = dma.hbm_to_vmem [thread:$0]  %s658_s1, 512, %s18_s13, [#allocation6], %s469_s22, %s469_s22, %s470_s23  }
  0x13   :  { %s471_s26 = smov [#allocation8]   ;;  %s430_s30 = scalar_lea.hbm %s659_s2, 512 }
  0x14   :  { %s29_s27 = sshll.u32 %s471_s26, 4  ;;  %p431_p8 = scmp.ne.s32.totalorder %s659_s2, %s430_s30  ;;  %s30_s27 = int_to_ptr.vmem [resolvable:$true] %s29_s27 }
  0x15   :  { %p434_p9 = scmp.lt.u32.totalorder %s430_s30, %s659_s2 }
  0x17   :  { %p436_p10 = pnand %p434_p9, %p431_p8 }
  0x19   :  { %439 = shalt.err (!%p436_p10)
}
  0x1a   :  { %s440_s8 = scalar_lea.vmem %s30_s27, 512  ;;  %p445_p12 = scmp.lt.s32.totalorder %s30_s27, %s30_s27 }
  0x1b   :  { %p441_p11 = scmp.ne.s32.totalorder %s30_s27, %s440_s8  ;;  %p446_p13 = scmp.lt.s32.totalorder %s440_s8, %s440_s8 }
  0x1d   :  { %p447_p0 = por %p446_p13, %p445_p12 }
  0x1f   :  { %p448_p1 = pnand %p447_p0, %p441_p11 }
  0x21   :  { %451 = shalt.err (!%p448_p1)
}
  0x22   :  { %35 = dma.hbm_to_vmem [thread:$0]  %s659_s2, 512, %s30_s27, [#allocation9], %s469_s22, %s469_s22, %s470_s23  }
  0x23   :  { %462 = dma.done.wait [#allocation6], 512  }
  0x24   :  { %463 = vsyncadd [#allocation6], 4294966784 }
  0x25   :  { %464 = dma.done.wait [#allocation9], 512  }
  0x26   :  { %465 = vsyncadd [#allocation9], 4294966784  ;;  %v231_v0 = vlaneseq  ;;  %v520_v7 = vstv %s657_s0  ;;  %v524_v11 = vld [vmem:[#allocation8] sm:$0xff]  ;;  %v526_v12 = vld [vmem:[#allocation8 + $0x8] sm:$0xff]  ;;  %s295_s13 = scvt.s32.f32 %s657_s0  ;;  %s452_s28 = scalar_lea.hbm %s660_s3, 16 }
  0x27   :  { %v528_v14 = vld [vmem:[#allocation8 + $0x10] sm:$0xff]  ;;  %v536_v17 = vld [vmem:[#allocation5] sm:$0xff]  ;;  %v538_v18 = vld [vmem:[#allocation5 + $0x8] sm:$0xff]  ;;  %p453_p2 = scmp.ne.s32.totalorder %s660_s3, %s452_s28  ;;  %p456_p3 = scmp.lt.u32.totalorder %s452_s28, %s660_s3 }
  0x28   :  { %v232_v1 = vshrl.u32 %v231_v0, 7  ;;  %v237_v2 = vand.u32 127, %v231_v0  ;;  %v546_v21 = vld [vmem:[#allocation5 + $0x10] sm:$0xff]  ;;  %v548_v22 = vld [vmem:[#allocation5 + $0x18] sm:$0xff]  ;;  %v164_v23 = vand.u32 2147483647, %v536_v17  ;;  %v204_v50 = vmul.f32 %v524_v11, %v536_v17 }
  0x29   :  { %v551_v24 = vld [vmem:[#allocation8 + $0x18] sm:$0xff]  ;;  %v165_v25 = vand.u32 2147483647, %v538_v18  ;;  %v166_v26 = vand.u32 2147483647, %v546_v21  ;;  %v205_v51 = vmul.f32 %v526_v12, %v538_v18  ;;  %v200_v52 = vmax.f32 %v536_v17, 0.0  ;;  %p458_p4 = pnand %p456_p3, %p453_p2 }
  0x2a   :  { %v233_v3 = vadd.s32 8, %v232_v1  ;;  %v234_v4 = vadd.s32 16, %v232_v1  ;;  %v235_v5 = vadd.s32 24, %v232_v1  ;;  %v238_v6 = vmul.u32 128, %v232_v1 }
  0x2b   :  { %v167_v29 = vand.u32 2147483647, %v548_v22  ;;  %v168_v31 = vsub.f32 0.0, %v164_v23  ;;  %v169_v32 = vsub.f32 0.0, %v165_v25  ;;  %v170_v34 = vsub.f32 0.0, %v166_v26 }
  0x2c   :  { %v239_v8 = vmul.u32 128, %v233_v3  ;;  %v240_v9 = vmul.u32 128, %v234_v4  ;;  %v522_v10 = vadd.s32 %v238_v6, %v237_v2  ;;  %v201_v53 = vmax.f32 %v538_v18, 0.0 }
  0x2d   :  { %v241_v13 = vmul.u32 128, %v235_v5  ;;  %v171_v35 = vsub.f32 0.0, %v167_v29  ;;  %v172_v37 = vmul.f32 1.442695, %v168_v31  ;;  %v174_v38 = vmul.f32 1.442695, %v169_v32 }
  0x2e   :  { %v530_v15 = vadd.s32 %v239_v8, %v237_v2  ;;  %v532_v16 = vadd.s32 %v240_v9, %v237_v2  ;;  %vm247_vm0 = vcmp.lt.s32.totalorder %v522_v10, %v520_v7  ;;  %v176_v39 = vmul.f32 1.442695, %v170_v34 }
  0x2f   :  { %v540_v19 = vadd.s32 %v241_v13, %v237_v2  ;;  %v259_v20 = vsel %vm247_vm0, %v524_v11, 0.0  ;;  %v178_v40 = vmul.f32 1.442695, %v171_v35  ;;  %382 = vpow2.f32 %v172_v37 }
  0x30   :  { %vm248_vm1 = vcmp.lt.s32.totalorder %v530_v15, %v520_v7  ;;  %vm249_vm2 = vcmp.lt.s32.totalorder %v532_v16, %v520_v7  ;;  %384 = vpow2.f32 %v174_v38  ;;  %v206_v54 = vmul.f32 %v528_v14, %v546_v21 }
  0x31   :  { %vm250_vm3 = vcmp.lt.s32.totalorder %v540_v19, %v520_v7  ;;  %v260_v27 = vsel %vm248_vm1, %v526_v12, 0.0  ;;  %v261_v28 = vsel %vm249_vm2, %v528_v14, 0.0  ;;  %386 = vpow2.f32 %v176_v39 }
  0x32   :  { %v280_v30 = vadd.f32 %v260_v27, %v259_v20  ;;  %v262_v33 = vsel %vm250_vm3, %v551_v24, 0.0  ;;  %388 = vpow2.f32 %v178_v40  ;;  %v207_v55 = vmul.f32 %v551_v24, %v548_v22 }
  0x33   :  { %v202_v56 = vmax.f32 %v546_v21, 0.0  ;;  %v203_v57 = vmax.f32 %v548_v22, 0.0  ;;  %vm188_vm4 = vcmp.ge.f32.partialorder %v536_v17, 0.0  ;;  %vm189_vm5 = vcmp.ge.f32.partialorder %v538_v18, 0.0 }
  0x34   :  { %v281_v36 = vadd.f32 %v280_v30, %v261_v28  ;;  %vm190_vm6 = vcmp.ge.f32.partialorder %v546_v21, 0.0  ;;  %vm191_vm7 = vcmp.ge.f32.partialorder %v548_v22, 0.0  ;;  %v208_v63 = vsub.f32 %v200_v52, %v204_v50 }
  0x35   :  { %v209_v0 = vsub.f32 %v201_v53, %v205_v51  ;;  %v210_v4 = vsub.f32 %v202_v56, %v206_v54  ;;  %v211_v5 = vsub.f32 %v203_v57, %v207_v55  ;;  %v336_v19 = vstv %s295_s13 }
  0x36   :  { %v282_v41 = vadd.f32 %v281_v36, %v262_v33 }
  0x38   :  { %317 = vadd.xlane.f32.xlu1 %v282_v41 }
  0x39   :  { %v383_v42 = vpop.eup %382 }
  0x3a   :  { %v385_v43 = vpop.eup %384  ;;  %v180_v44 = vadd.f32 1.0, %v383_v42 }
  0x3b   :  { %v387_v45 = vpop.eup %386  ;;  %v181_v46 = vadd.f32 1.0, %v385_v43 }
  0x3c   :  { %v389_v47 = vpop.eup %388  ;;  %v182_v48 = vadd.f32 1.0, %v387_v45  ;;  %390 = vrcp.f32 %v180_v44 }
  0x3d   :  { %v183_v49 = vadd.f32 1.0, %v389_v47  ;;  %392 = vrcp.f32 %v181_v46 }
  0x3e   :  { %394 = vrcp.f32 %v182_v48 }
  0x3f   :  { %396 = vrcp.f32 %v183_v49 }
  0x40   :  { %398 = vlog2.f32 %v180_v44 }
  0x41   :  { %400 = vlog2.f32 %v181_v46 }
  0x42   :  { %402 = vlog2.f32 %v182_v48 }
  0x43   :  { %404 = vlog2.f32 %v183_v49 }
  0x44   :  { %406 = vrcp.f32 %v336_v19 }
  0x46   :  { %v391_v58 = vpop.eup %390 }
  0x47   :  { %v393_v59 = vpop.eup %392  ;;  %v192_v60 = vmul.f32 %v391_v58, %v383_v42 }
  0x48   :  { %v395_v61 = vpop.eup %394  ;;  %v193_v62 = vmul.f32 %v393_v59, %v385_v43 }
  0x49   :  { %v397_v1 = vpop.eup %396  ;;  %v194_v2 = vmul.f32 %v395_v61, %v387_v45  ;;  %v196_v3 = vsel %vm188_vm4, %v391_v58, %v192_v60 }
  0x4a   :  { %v399_v6 = vpop.eup %398  ;;  %v195_v8 = vmul.f32 %v397_v1, %v389_v47  ;;  %v197_v9 = vsel %vm189_vm5, %v393_v59, %v193_v62  ;;  %v263_v13 = vsel %vm247_vm0, %v196_v3, 0.0  ;;  %v224_v17 = vmul.f32 %v196_v3, %v524_v11 }
  0x4b   :  { %v401_v18 = vpop.eup %400  ;;  %v198_v20 = vsel %vm190_vm6, %v395_v61, %v194_v2  ;;  %v264_v23 = vsel %vm248_vm1, %v197_v9, 0.0  ;;  %v213_v25 = vmul.f32 0.6931472, %v399_v6  ;;  %v225_v26 = vmul.f32 %v197_v9, %v526_v12 }
  0x4c   :  { %v403_v27 = vpop.eup %402  ;;  %v199_v28 = vsel %vm191_vm7, %v397_v1, %v195_v8  ;;  %v265_v29 = vsel %vm249_vm2, %v198_v20, 0.0  ;;  %v287_v11 = vadd.f32 %v264_v23, %v263_v13  ;;  %v215_v30 = vmul.f32 0.6931472, %v401_v18 }
  0x4d   :  { %v405_v31 = vpop.eup %404  ;;  %v266_v21 = vsel %vm250_vm3, %v199_v28, 0.0  ;;  %v217_v32 = vmul.f32 0.6931472, %v403_v27  ;;  %v220_v33 = vadd.f32 %v213_v25, %v208_v63  ;;  %v226_v34 = vmul.f32 %v198_v20, %v528_v14 }
  0x4e   :  { %v288_v12 = vadd.f32 %v287_v11, %v265_v29  ;;  %v219_v35 = vmul.f32 0.6931472, %v405_v31  ;;  %v221_v36 = vadd.f32 %v215_v30, %v209_v0  ;;  %v227_v22 = vmul.f32 %v199_v28, %v551_v24  ;;  %v407_v18 = vpop.eup %406 }
  0x4f   :  { %v222_v37 = vadd.f32 %v217_v32, %v210_v4  ;;  %v251_v38 = vsel %vm247_vm0, %v220_v33, 0.0  ;;  %v255_v39 = vsel %vm247_vm0, %v224_v17, 0.0  ;;  %v256_v40 = vsel %vm248_vm1, %v225_v26, 0.0 }
  0x50   :  { %v289_v41 = vadd.f32 %v288_v12, %v266_v21  ;;  %v223_v14 = vadd.f32 %v219_v35, %v211_v5  ;;  %v252_v42 = vsel %vm248_vm1, %v221_v36, 0.0  ;;  %v257_v24 = vsel %vm249_vm2, %v226_v34, 0.0 }
  0x51   :  { %v253_v43 = vsel %vm249_vm2, %v222_v37, 0.0  ;;  %v267_v10 = vadd.f32 %v252_v42, %v251_v38  ;;  %v273_v44 = vadd.f32 %v256_v40, %v255_v39  ;;  %v258_v15 = vsel %vm250_vm3, %v227_v22, 0.0 }
  0x52   :  { %327 = vadd.xlane.f32.xlu1 %v289_v41  ;;  %v254_v45 = vsel %vm250_vm3, %v223_v14, 0.0 }
  0x53   :  { %v268_v46 = vadd.f32 %v267_v10, %v253_v43  ;;  %v274_v47 = vadd.f32 %v273_v44, %v257_v24 }
  0x55   :  { %v269_v48 = vadd.f32 %v268_v46, %v254_v45  ;;  %v275_v49 = vadd.f32 %v274_v47, %v258_v15 }
  0x57   :  { %297 = vadd.xlane.f32.xlu0 %v269_v48 }
  0x5b   :  { %307 = vadd.xlane.f32.xlu0 %v275_v49 }
  0xc5   :  { %v318_v50 = vpop.xlane.xlu1 %317 }
  0xc6   :  { %v319_v51 = vrot.slane %v318_v50, 4 }
  0xc8   :  { %v320_v53 = vadd.f32 %v319_v51, %v318_v50 }
  0xca   :  { %v321_v58 = vrot.slane %v320_v53, 2 }
  0xcc   :  { %v322_v0 = vadd.f32 %v321_v58, %v320_v53 }
  0xce   :  { %v323_v6 = vrot.slane %v322_v0, 1 }
  0xd0   :  { %v324_v17 = vadd.f32 %v323_v6, %v322_v0 }
  0xdf   :  { %v328_v16 = vpop.xlane.xlu1 %327 }
  0xe0   :  { %v329_v52 = vrot.slane %v328_v16, 4 }
  0xe2   :  { %v330_v55 = vadd.f32 %v329_v52, %v328_v16 }
  0xe4   :  { %v298_v54 = vpop.xlane.xlu0 %297  ;;  %v331_v59 = vrot.slane %v330_v55, 2 }
  0xe5   :  { %v299_v56 = vrot.slane %v298_v54, 4 }
  0xe6   :  { %v332_v1 = vadd.f32 %v331_v59, %v330_v55 }
  0xe7   :  { %v300_v57 = vadd.f32 %v299_v56, %v298_v54 }
  0xe8   :  { %v308_v7 = vpop.xlane.xlu0 %307  ;;  %v333_v9 = vrot.slane %v332_v1, 1 }
  0xe9   :  { %v301_v60 = vrot.slane %v300_v57, 2  ;;  %v309_v61 = vrot.slane %v308_v7, 4 }
  0xea   :  { %v334_v20 = vadd.f32 %v333_v9, %v332_v1 }
  0xeb   :  { %v310_v62 = vadd.f32 %v309_v61, %v308_v7  ;;  %v302_v63 = vadd.f32 %v301_v60, %v300_v57 }
  0xed   :  { %v311_v2 = vrot.slane %v310_v62, 2  ;;  %v303_v3 = vrot.slane %v302_v63, 1 }
  0xef   :  { %v312_v4 = vadd.f32 %v311_v2, %v310_v62  ;;  %v304_v5 = vadd.f32 %v303_v3, %v302_v63 }
  0xf1   :  { %367 = vpush %v304_v5  ;;  %v313_v8 = vrot.slane %v312_v4, 1 }
  0xf3   :  { %v314_v13 = vadd.f32 %v313_v8, %v312_v4 }
  0xf5   :  { %369 = vpush %v314_v13 }
  0xf6   :  { %371 = vpush %v324_v17 }
  0xf7   :  { %373 = vpush %v334_v20 }
  0xf8   :  { %375 = vpush %v407_v18 }
 0x122   :  { %s368_s16 = spop %367 }
 0x126   :  { %s370_s17 = spop %369 }
 0x127   :  { %343 = sst [smem:[#allocation10 + $0x1]] %s370_s17  ;;  %s372_s18 = spop %371 }
 0x128   :  { %345 = sst [smem:[#allocation10 + $0x2]] %s372_s18  ;;  %s374_s19 = spop %373 }
 0x129   :  { %s349_s22 = ssub.f32 %s295_s13, %s372_s18  ;;  %s376_s23 = spop %375 }
 0x12a   :  { %s346_s24 = ssub.f32 %s374_s19, %s370_s17  ;;  %s339_s25 = smul.f32 %s376_s23, %s368_s16 }
 0x12b   :  { %351 = sst [smem:[#allocation10 + $0x4]] %s349_s22 }
 0x12c   :  { %348 = sst [smem:[#allocation10 + $0x3]] %s346_s24 }
 0x12d   :  { %341 = sst [smem:[#allocation10]] %s339_s25 }
 0x12e   :  { %461 = shalt.err (!%p458_p4)
}
 0x12f   :  { %s472_s0 = smov [#allocation10]  }
 0x130   :  { %359 = dma.smem_to_hbm %s472_s0, 16, %s660_s3, [#allocation7]  }
 0x131   :  { %466 = dma.done.wait [#allocation7], 16  }
 0x132   :  { %467 = vsyncadd [#allocation7], 4294967280 }
 0x133   :  { %363 = sfence }
 0x134   :  { %364 = vsyncpa [#allocation6], 1 }
 0x135   :  { %365 = vsyncpa [#allocation9], 1 }
 0x136   :  { %366 = vsyncpa [#allocation7], 1 }

</bundles_post_ra>
